<compile_context>
chip_gen: v5e
topology: v5e:2x2
jax: 0.10.0
libtpu: 0.0.40
codegen_flags: <defaults>
</compile_context>

<pallas_src>
import functools
import math

import numpy as np
import jax
import jax.numpy as jnp
from jax.experimental import pallas as pl
from jax.experimental.pallas import tpu as pltpu


# ----------------------------------------------------------------------------
# Fused kernel: [x @ W0x + onehot(ids) @ Wemb + b0] -> tanh -> [Linear->Tanh]*
# Operates on row-packed data: each kernel row holds g logical rows.
# ----------------------------------------------------------------------------
def _make_fused_kernel(has_embed, num_hidden):
    def kernel(*refs):
        o_ref = refs[-1]
        pos = 0
        x_ref = refs[pos]; pos += 1
        if has_embed:
            ids_ref = refs[pos]
            lidx_ref = refs[pos + 1]
            expand_ref = refs[pos + 2]
            pos += 3
        w0x_ref = refs[pos]; pos += 1
        if has_embed:
            wemb_ref = refs[pos]; pos += 1
        b0_ref = refs[pos]; pos += 1
        layer_refs = refs[pos:pos + 2 * (num_hidden - 1)]

        # Layer 0, part 1: non-embedded columns through zero-padded block-diag
        # weight (bf16 operands, f32 accumulate).
        xb = x_ref[...].astype(jnp.bfloat16)                  # (tile, g*num_cols)
        h = jnp.dot(xb, w0x_ref[...], preferred_element_type=jnp.float32)
        h = h + b0_ref[...]                                   # (tile, g*h0) f32

        # Layer 0, part 2: embedding gather as a single one-hot matmul.
        if has_embed:
            ids = ids_ref[...].astype(jnp.float32)            # (tile, g*n_e)
            # Expand ids across the one-hot lanes via a tiny exact f32 matmul,
            # then ONE compare against the per-lane local index -> one-hot.
            ids_exp = jnp.dot(ids, expand_ref[...],
                              preferred_element_type=jnp.float32)   # (tile, g*E)
            onehot = (ids_exp == lidx_ref[...]).astype(jnp.bfloat16)
            h = h + jnp.dot(onehot, wemb_ref[...],
                            preferred_element_type=jnp.float32)
        h = jnp.tanh(h)

        # Remaining Linear -> Tanh layers (block-diagonal bf16 weights).
        for l in range(num_hidden - 1):
            w = layer_refs[2 * l][...]
            b = layer_refs[2 * l + 1][...]
            h = jnp.dot(h.astype(jnp.bfloat16), w,
                        preferred_element_type=jnp.float32) + b
            h = jnp.tanh(h)

        o_ref[...] = h.astype(o_ref.dtype)

    return kernel


# ----------------------------------------------------------------------------
# Generation detection (VMEM capacity + chip kind), with safe fallbacks.
# ----------------------------------------------------------------------------
def _tpu_vmem_and_kind():
    kind = ""
    vmem = None
    try:
        kind = jax.devices()[0].device_kind.lower()
    except Exception:
        kind = ""
    try:
        info = pltpu.get_tpu_info()
        vmem = int(getattr(info, "vmem_capacity_bytes"))
    except Exception:
        vmem = None
    if vmem is None or vmem <= 0:
        if "v7" in kind:
            vmem = 64 << 20
        elif kind:
            vmem = 128 << 20          # v5e / v6e
        else:
            vmem = 64 << 20           # unknown -> conservative
    return vmem, kind


# ----------------------------------------------------------------------------
# Full TimeSeriesStateNN forward (wrapper builds packed operands + calls kernel)
# ----------------------------------------------------------------------------
def timeseries_state_nn_forward(x, params, embed_idx_order, *, out_dtype=None):
    """x: (..., num_predictors) float.  Returns (..., hidden[-1])."""
    num_cols = x.shape[-1]
    embed_idx_order = list(embed_idx_order)
    n_e = len(embed_idx_order)
    forward_idx = [i for i in range(num_cols) if i not in embed_idx_order]
    n_fwd = len(forward_idx)

    weights = params["weights"]          # list of (in_f, out_f), pre-transposed
    biases = params["biases"]            # list of (out_f,)
    num_hidden = len(weights)
    assert num_hidden >= 1
    hidden_dims = [int(w.shape[1]) for w in weights]
    h0, out_f = hidden_dims[0], hidden_dims[-1]
    out_dtype = jnp.dtype(out_dtype or x.dtype)
    out_isz = out_dtype.itemsize

    # ---- row-packing factor: make the output last dim a multiple of 128 ----
    g = 128 // math.gcd(out_f, 128)
    if g > 16:
        g = 1
    w_elems = sum(int(w.size) for w in weights)
    if g > 1 and g * g * w_elems * 2 > (8 << 20):   # keep kron'd bf16 weights small
        g = 1

    # ---- trace-time weight prep (tiny matrices, plain XLA) ----
    eye_g = jnp.eye(g, dtype=jnp.float32)
    W0 = weights[0].astype(jnp.float32)                       # (in_features, h0)
    W0x = jnp.zeros((num_cols, h0), jnp.float32)
    if n_fwd:
        W0x = W0x.at[jnp.array(forward_idx)].set(W0[:n_fwd])
    W0x_bd = jnp.kron(eye_g, W0x).astype(jnp.bfloat16)        # (g*num_cols, g*h0)
    b0_t = jnp.tile(biases[0].reshape(1, -1).astype(jnp.float32), (1, g))

    E = 0
    Wemb = lidx = expand = None
    if n_e:
        We_list, n_embs = [], []
        off = n_fwd
        for idx in embed_idx_order:
            table = params["embed"][idx].astype(jnp.float32)  # (n_emb, d)
            n_emb, d = int(table.shape[0]), int(table.shape[1])
            We_list.append(table @ W0[off:off + d])            # (n_emb, h0) fused
            n_embs.append(n_emb)
            off += d
        E = sum(n_embs)
        seg_off = np.concatenate([[0], np.cumsum(n_embs)]).astype(np.int64)
        We_stack = jnp.concatenate(We_list, axis=0)            # (E, h0)
        Wemb = jnp.kron(eye_g, We_stack).astype(jnp.bfloat16)  # (g*E, g*h0)
        # Constant id->lane expansion matrix and per-lane local index (numpy).
        expand_small = np.zeros((n_e, E), np.float32)
        lidx_small = np.zeros((1, E), np.float32)
        for e in range(n_e):
            s = int(seg_off[e])
            expand_small[e, s:s + n_embs[e]] = 1.0
            lidx_small[0, s:s + n_embs[e]] = np.arange(n_embs[e], dtype=np.float32)
        expand = jnp.asarray(np.kron(np.eye(g, dtype=np.float32), expand_small))
        lidx = jnp.asarray(np.tile(lidx_small, (1, g)))        # (1, g*E)

    layer_ops = []
    for l in range(1, num_hidden):
        layer_ops.append(jnp.kron(eye_g, weights[l].astype(jnp.float32))
                         .astype(jnp.bfloat16))
        layer_ops.append(jnp.tile(biases[l].reshape(1, -1).astype(jnp.float32),
                                  (1, g)))

    # ---- generation-aware tile sizing (VMEM budgeted, not row-count) ----
    vmem_cap, kind = _tpu_vmem_and_kind()
    is_v7 = "v7" in kind

    lead = x.shape[:-1]
    x2d = x.reshape(-1, num_cols).astype(jnp.float32)
    rows = x2d.shape[0]
    packed_rows = -(-rows // g)

    # Rough per-packed-row VMEM bytes: double-buffered I/O + f32/bf16 temporaries.
    io_row = 2 * (g * num_cols * 4 + g * n_e * 4 + g * out_f * out_isz)
    tmp_row = 8 * (g * num_cols + g * E) + 8 * g * sum(hidden_dims)
    per_row = max(1, io_row + tmp_row)

    budget = min(int(vmem_cap * 0.45), (36 << 20) if is_v7 else (64 << 20))
    tile_pack = max(16, budget // per_row)
    tile_pack = min(tile_pack, 4096 if is_v7 else 8192)
    min_steps = 4 if is_v7 else 2                      # keep both v7x TCs busy
    if packed_rows >= min_steps * 16:
        tile_pack = min(tile_pack, pl.cdiv(packed_rows, min_steps))
    tile_pack = min(tile_pack, packed_rows)
    tile_pack = max(16, (tile_pack // 16) * 16)        # (16,128)-safe alignment

    packed_rows_pad = pl.cdiv(packed_rows, tile_pack) * tile_pack
    rows_pad = packed_rows_pad * g
    if rows_pad != rows:
        x2d = jnp.pad(x2d, ((0, rows_pad - rows), (0, 0)))
    xp = x2d.reshape(packed_rows_pad, g * num_cols)    # free row-major view
    grid_steps = packed_rows_pad // tile_pack

    ids_p = None
    if n_e:
        cols = jnp.asarray(embed_idx_order, dtype=jnp.int32)
        ids2d = jnp.take(x2d, cols, axis=1).astype(jnp.int32)   # truncation == torch .to(long)
        ids_p = ids2d.reshape(packed_rows_pad, g * n_e)

    # ---- operands / specs ----
    operands = [xp]
    in_specs = [pl.BlockSpec((tile_pack, g * num_cols), lambda i: (i, 0))]
    if n_e:
        operands += [ids_p, lidx, expand]
        in_specs += [pl.BlockSpec((tile_pack, g * n_e), lambda i: (i, 0)),
                     pl.BlockSpec(lidx.shape, lambda i: (0, 0)),
                     pl.BlockSpec(expand.shape, lambda i: (0, 0))]
    operands.append(W0x_bd)
    in_specs.append(pl.BlockSpec(W0x_bd.shape, lambda i: (0, 0)))
    if n_e:
        operands.append(Wemb)
        in_specs.append(pl.BlockSpec(Wemb.shape, lambda i: (0, 0)))
    operands.append(b0_t)
    in_specs.append(pl.BlockSpec(b0_t.shape, lambda i: (0, 0)))
    for op in layer_ops:
        operands.append(op)
        in_specs.append(pl.BlockSpec(op.shape, lambda i: (0, 0)))

    out_spec = pl.BlockSpec((tile_pack, g * out_f), lambda i: (i, 0))
    out_shape = jax.ShapeDtypeStruct((packed_rows_pad, g * out_f), out_dtype)

    const_ops = [W0x_bd, b0_t] + layer_ops + ([Wemb, lidx, expand] if n_e else [])
    weight_bytes = sum(int(o.size) * jnp.dtype(o.dtype).itemsize for o in const_ops)

    vmem_limit = per_row * tile_pack + 2 * weight_bytes + (4 << 20)
    vmem_limit = max(32 << 20, int(vmem_limit))
    vmem_limit = min(vmem_limit, int(vmem_cap * 3 // 4))

    # Advisory cost estimate so XLA schedules surrounding ops sensibly.
    PR = packed_rows_pad
    flops = 2 * PR * (g * num_cols) * (g * h0)
    if n_e:
        flops += 2 * PR * (g * n_e) * (g * E) + 2 * PR * (g * E) * (g * h0)
    for l in range(1, num_hidden):
        flops += 2 * PR * (g * hidden_dims[l - 1]) * (g * hidden_dims[l])
    transcendentals = PR * g * sum(hidden_dims)
    bytes_accessed = int(xp.size) * 4 + PR * g * out_f * out_isz + weight_bytes
    if n_e:
        bytes_accessed += int(ids_p.size) * 4

    out = pl.pallas_call(
        _make_fused_kernel(n_e > 0, num_hidden),
        out_shape=out_shape,
        grid=(grid_steps,),
        in_specs=in_specs,
        out_specs=out_spec,
        compiler_params=pltpu.CompilerParams(
            dimension_semantics=("parallel",),
            vmem_limit_bytes=int(vmem_limit)),
        cost_estimate=pl.CostEstimate(
            flops=int(flops),
            transcendentals=int(transcendentals),
            bytes_accessed=int(bytes_accessed)),
    )(*operands)

    out = out.reshape(rows_pad, out_f)[:rows]
    return out.reshape(*lead, out_f)


# ----------------------------------------------------------------------------
# Deterministic parameter init (mirrors torch.nn.Linear / Embedding shapes)
# ----------------------------------------------------------------------------
def init_params(key, num_predictors, hidden, embed_inputs):
    in_features = num_predictors
    for ei in embed_inputs.values():
        in_features += ei["embedding_dim"] - 1

    params = {"embed": {}, "weights": [], "biases": []}

    for idx, ei in embed_inputs.items():
        key, k = jax.random.split(key)
        params["embed"][idx] = jax.random.normal(
            k, (ei["num_embeddings"], ei["embedding_dim"]), jnp.float32)

    prev = in_features
    for outf in hidden:
        key, kw, kb = jax.random.split(key, 3)
        bound = 1.0 / jnp.sqrt(prev)
        # stored as (in, out): y = x @ W + b  (== torch's x @ W.T)
        params["weights"].append(
            jax.random.uniform(kw, (prev, outf), jnp.float32, -bound, bound))
        params["biases"].append(
            jax.random.uniform(kb, (outf,), jnp.float32, -bound, bound))
        prev = outf

    return params, in_features


# ----------------------------------------------------------------------------
if __name__ == "__main__":
    key = jax.random.PRNGKey(0)

    # Module config
    num_predictors = 5
    hidden = (32, 16)
    embed_inputs = {2: {"num_embeddings": 10, "embedding_dim": 4}}
    embed_idx_order = list(embed_inputs.keys())

    params, in_features = init_params(key, num_predictors, hidden, embed_inputs)

    # Example input: (batch=2, seq=8, num_predictors=5); column 2 holds
    # integer-valued category ids (as floats, like the torch module expects).
    key, kx, ki = jax.random.split(key, 3)
    B, T = 2, 8
    x = jax.random.normal(kx, (B, T, num_predictors), jnp.float32)
    ids = jax.random.randint(ki, (B, T), 0, embed_inputs[2]["num_embeddings"])
    x = x.at[..., 2].set(ids.astype(jnp.float32))

    fwd = functools.partial(
        timeseries_state_nn_forward,
        params=params,
        embed_idx_order=embed_idx_order,
    )
    out = jax.jit(fwd)(x)
    out = jax.block_until_ready(out)

    assert out.shape == (B, T, hidden[-1]), out.shape

    # Pure-JAX f32 reference for a sanity check (kernel matmuls are bf16, so
    # tolerance is loosened accordingly).
    fwd_cols = [i for i in range(num_predictors) if i not in embed_idx_order]
    feats_ref = jnp.concatenate(
        [
            x[..., jnp.array(fwd_cols)],
            jnp.take(params["embed"][2], x[..., 2].astype(jnp.int32), axis=0),
        ],
        axis=-1,
    )
    h = feats_ref
    for w, b in zip(params["weights"], params["biases"]):
        h = jnp.tanh(h @ w + b)
    err = float(jnp.max(jnp.abs(out - h)))
    assert jnp.allclose(out, h, atol=2.5e-2, rtol=2.5e-2), err

    print("KERNEL_OK")
</pallas_src>

<mosaic_0001>
module attributes {stable_mosaic.version = 11 : i64} {
  func.func @kernel(%arg0: i32, %arg1: memref<16x40xf32, #tpu.memory_space<vmem>>, %arg2: memref<16x8xi32, #tpu.memory_space<vmem>>, %arg3: memref<1x80xf32, #tpu.memory_space<vmem>>, %arg4: memref<8x80xf32, #tpu.memory_space<vmem>>, %arg5: memref<40x256xbf16, #tpu.memory_space<vmem>>, %arg6: memref<80x256xbf16, #tpu.memory_space<vmem>>, %arg7: memref<1x256xf32, #tpu.memory_space<vmem>>, %arg8: memref<256x128xbf16, #tpu.memory_space<vmem>>, %arg9: memref<1x128xf32, #tpu.memory_space<vmem>>, %arg10: memref<16x128xf32, #tpu.memory_space<vmem>>) attributes {dimension_semantics = [#tpu.dimension_semantics<parallel>], iteration_bounds = array<i64: 1>, scalar_prefetch = 0 : i64, scratch_operands = 0 : i64, tpu.core_type = #tpu.core_type<tc>, window_params = [{transform_indices = @transform_0, window_bounds = array<i64: 16, 40>}, {transform_indices = @transform_1, window_bounds = array<i64: 16, 8>}, {pipeline_mode = #tpu.pipeline_mode<synchronous>, transform_indices = @transform_2, window_bounds = array<i64: 1, 80>}, {pipeline_mode = #tpu.pipeline_mode<synchronous>, transform_indices = @transform_3, window_bounds = array<i64: 8, 80>}, {pipeline_mode = #tpu.pipeline_mode<synchronous>, transform_indices = @transform_4, window_bounds = array<i64: 40, 256>}, {pipeline_mode = #tpu.pipeline_mode<synchronous>, transform_indices = @transform_5, window_bounds = array<i64: 80, 256>}, {pipeline_mode = #tpu.pipeline_mode<synchronous>, transform_indices = @transform_6, window_bounds = array<i64: 1, 256>}, {pipeline_mode = #tpu.pipeline_mode<synchronous>, transform_indices = @transform_7, window_bounds = array<i64: 256, 128>}, {pipeline_mode = #tpu.pipeline_mode<synchronous>, transform_indices = @transform_8, window_bounds = array<i64: 1, 128>}, {transform_indices = @transform_9, window_bounds = array<i64: 16, 128>}]} {
    %c0 = arith.constant 0 : index
    %c0_0 = arith.constant 0 : index
    %0 = vector.load %arg1[%c0, %c0_0] : memref<16x40xf32, #tpu.memory_space<vmem>>, vector<16x40xf32>
    %1 = arith.truncf %0 : vector<16x40xf32> to vector<16x40xbf16>
    %c0_1 = arith.constant 0 : index
    %c0_2 = arith.constant 0 : index
    %2 = vector.load %arg5[%c0_1, %c0_2] : memref<40x256xbf16, #tpu.memory_space<vmem>>, vector<40x256xbf16>
    %cst = arith.constant dense<0.000000e+00> : vector<16x256xf32>
    %3 = tpu.matmul %1, %2, %cst {dimension_numbers = #tpu.dot_dimension_numbers<[1], [0], [0], [1], [0, 0, 1, 1], [], []>} : vector<16x40xbf16>, vector<40x256xbf16>, vector<16x256xf32> -> vector<16x256xf32>
    %c0_3 = arith.constant 0 : index
    %c0_4 = arith.constant 0 : index
    %4 = vector.load %arg7[%c0_3, %c0_4] : memref<1x256xf32, #tpu.memory_space<vmem>>, vector<1x256xf32>
    %5 = vector.broadcast %4 : vector<1x256xf32> to vector<16x256xf32>
    %6 = arith.addf %3, %5 : vector<16x256xf32>
    %c0_5 = arith.constant 0 : index
    %c0_6 = arith.constant 0 : index
    %7 = vector.load %arg2[%c0_5, %c0_6] : memref<16x8xi32, #tpu.memory_space<vmem>>, vector<16x8xi32>
    %8 = arith.sitofp %7 : vector<16x8xi32> to vector<16x8xf32>
    %c0_7 = arith.constant 0 : index
    %c0_8 = arith.constant 0 : index
    %9 = vector.load %arg4[%c0_7, %c0_8] : memref<8x80xf32, #tpu.memory_space<vmem>>, vector<8x80xf32>
    %cst_9 = arith.constant dense<0.000000e+00> : vector<16x80xf32>
    %10 = tpu.matmul %8, %9, %cst_9 {dimension_numbers = #tpu.dot_dimension_numbers<[1], [0], [0], [1], [0, 0, 1, 1], [], []>} : vector<16x8xf32>, vector<8x80xf32>, vector<16x80xf32> -> vector<16x80xf32>
    %c0_10 = arith.constant 0 : index
    %c0_11 = arith.constant 0 : index
    %11 = vector.load %arg3[%c0_10, %c0_11] : memref<1x80xf32, #tpu.memory_space<vmem>>, vector<1x80xf32>
    %12 = vector.broadcast %11 : vector<1x80xf32> to vector<16x80xf32>
    %13 = arith.cmpf oeq, %10, %12 : vector<16x80xf32>
    %14 = arith.extui %13 : vector<16x80xi1> to vector<16x80xi32>
    %15 = arith.sitofp %14 : vector<16x80xi32> to vector<16x80xf32>
    %16 = arith.truncf %15 : vector<16x80xf32> to vector<16x80xbf16>
    %c0_12 = arith.constant 0 : index
    %c0_13 = arith.constant 0 : index
    %17 = vector.load %arg6[%c0_12, %c0_13] : memref<80x256xbf16, #tpu.memory_space<vmem>>, vector<80x256xbf16>
    %cst_14 = arith.constant dense<0.000000e+00> : vector<16x256xf32>
    %18 = tpu.matmul %16, %17, %cst_14 {dimension_numbers = #tpu.dot_dimension_numbers<[1], [0], [0], [1], [0, 0, 1, 1], [], []>} : vector<16x80xbf16>, vector<80x256xbf16>, vector<16x256xf32> -> vector<16x256xf32>
    %19 = arith.addf %6, %18 : vector<16x256xf32>
    %20 = math.tanh %19 : vector<16x256xf32>
    %c0_15 = arith.constant 0 : index
    %c0_16 = arith.constant 0 : index
    %21 = vector.load %arg8[%c0_15, %c0_16] : memref<256x128xbf16, #tpu.memory_space<vmem>>, vector<256x128xbf16>
    %c0_17 = arith.constant 0 : index
    %c0_18 = arith.constant 0 : index
    %22 = vector.load %arg9[%c0_17, %c0_18] : memref<1x128xf32, #tpu.memory_space<vmem>>, vector<1x128xf32>
    %23 = arith.truncf %20 : vector<16x256xf32> to vector<16x256xbf16>
    %cst_19 = arith.constant dense<0.000000e+00> : vector<16x128xf32>
    %24 = tpu.matmul %23, %21, %cst_19 {dimension_numbers = #tpu.dot_dimension_numbers<[1], [0], [0], [1], [0, 0, 1, 1], [], []>} : vector<16x256xbf16>, vector<256x128xbf16>, vector<16x128xf32> -> vector<16x128xf32>
    %25 = vector.broadcast %22 : vector<1x128xf32> to vector<16x128xf32>
    %26 = arith.addf %24, %25 : vector<16x128xf32>
    %27 = math.tanh %26 : vector<16x128xf32>
    %c0_20 = arith.constant 0 : index
    %c0_21 = arith.constant 0 : index
    %28 = vector.load %arg10[%c0_20, %c0_21] : memref<16x128xf32, #tpu.memory_space<vmem>>, vector<16x128xf32>
    tpu.vector_store %arg10[%c0_20, %c0_21], %27 {strides = array<i32>} : memref<16x128xf32, #tpu.memory_space<vmem>>, vector<16x128xf32>,
    return
  }
  func.func @transform_0(%arg0: i32) -> (i32, i32) {
    %c0_i32 = arith.constant 0 : i32
    %c0_i32_0 = arith.constant 0 : i32
    return %arg0, %c0_i32 : i32, i32
  }
  func.func @transform_1(%arg0: i32) -> (i32, i32) {
    %c0_i32 = arith.constant 0 : i32
    %c0_i32_0 = arith.constant 0 : i32
    return %arg0, %c0_i32 : i32, i32
  }
  func.func @transform_2(%arg0: i32) -> (i32, i32) {
    %c0_i32 = arith.constant 0 : i32
    %c0_i32_0 = arith.constant 0 : i32
    %c0_i32_1 = arith.constant 0 : i32
    return %c0_i32, %c0_i32_0 : i32, i32
  }
  func.func @transform_3(%arg0: i32) -> (i32, i32) {
    %c0_i32 = arith.constant 0 : i32
    %c0_i32_0 = arith.constant 0 : i32
    %c0_i32_1 = arith.constant 0 : i32
    return %c0_i32, %c0_i32_0 : i32, i32
  }
  func.func @transform_4(%arg0: i32) -> (i32, i32) {
    %c0_i32 = arith.constant 0 : i32
    %c0_i32_0 = arith.constant 0 : i32
    %c0_i32_1 = arith.constant 0 : i32
    return %c0_i32, %c0_i32_0 : i32, i32
  }
  func.func @transform_5(%arg0: i32) -> (i32, i32) {
    %c0_i32 = arith.constant 0 : i32
    %c0_i32_0 = arith.constant 0 : i32
    %c0_i32_1 = arith.constant 0 : i32
    return %c0_i32, %c0_i32_0 : i32, i32
  }
  func.func @transform_6(%arg0: i32) -> (i32, i32) {
    %c0_i32 = arith.constant 0 : i32
    %c0_i32_0 = arith.constant 0 : i32
    %c0_i32_1 = arith.constant 0 : i32
    return %c0_i32, %c0_i32_0 : i32, i32
  }
  func.func @transform_7(%arg0: i32) -> (i32, i32) {
    %c0_i32 = arith.constant 0 : i32
    %c0_i32_0 = arith.constant 0 : i32
    %c0_i32_1 = arith.constant 0 : i32
    return %c0_i32, %c0_i32_0 : i32, i32
  }
  func.func @transform_8(%arg0: i32) -> (i32, i32) {
    %c0_i32 = arith.constant 0 : i32
    %c0_i32_0 = arith.constant 0 : i32
    %c0_i32_1 = arith.constant 0 : i32
    return %c0_i32, %c0_i32_0 : i32, i32
  }
  func.func @transform_9(%arg0: i32) -> (i32, i32) {
    %c0_i32 = arith.constant 0 : i32
    %c0_i32_0 = arith.constant 0 : i32
    return %arg0, %c0_i32 : i32, i32
  }
}

</mosaic_0001>

<bundles_post_ra>
// kernel: timeseries_state_nn_forward.1
= control target key start
LH: loop header
LB: loop body
LE: loop exit
PB: predicated region body
PF: predicated region fallthrough
CT: control target
= control target key end

     0   :  { %vm116_vm0 = vcmask 64512   ;;  %vm76_vm1 = vcmask 1043456   ;;  %vm72_vm2 = vcmask 326656   ;;  %v600_v62 = vmov 0.0   ;;  %s820_s3 = inlined_call_operand.vmem [shape: f32[8,80], index: 3, kind: input, shape index: {}]   ;;  %s821_s1 = inlined_call_operand.vmem [shape: s32[16,8], index: 1, kind: input, shape index: {}]   ;;  %s822_s4 = inlined_call_operand.vmem [shape: bf16[40,256], index: 4, kind: input, shape index: {}]   ;;  %s823_s5 = inlined_call_operand.vmem [shape: bf16[80,256], index: 5, kind: input, shape index: {}]   ;;  %s824_s2 = inlined_call_operand.vmem [shape: f32[1,80], index: 2, kind: input, shape index: {}]   ;;  %s825_s0 = inlined_call_operand.vmem [shape: f32[16,40], index: 0, kind: input, shape index: {}]   ;;  %s826_s7 = inlined_call_operand.vmem [shape: bf16[256,128], index: 7, kind: input, shape index: {}]   ;;  %s827_s8 = inlined_call_operand.vmem [shape: f32[1,128], index: 8, kind: input, shape index: {}]   ;;  %s828_s6 = inlined_call_operand.vmem [shape: f32[1,256], index: 6, kind: input, shape index: {}]   ;;  %s829_s9 = inlined_call_operand.vmem [shape: f32[16,128], index: 9, kind: output, shape index: {}]  }
   0x1   :  { %v115_v0 = vld [vmem:[%s820_s3] sm:$0xff]  ;;  %v112_v6 = vld [vmem:[%s821_s1 + $0x8] sm:$0xff]  ;;  %v437_v7 = vld [vmem:[%s822_s4 + $0x10] sm:$0xf]  ;;  %vm217_vm5 = vcmask 654336  }
   0x2   :  { %v111_v1 = vld [vmem:[%s821_s1] sm:$0xff]  ;;  %138 = vmatpush.msra.mxu2 %v115_v0  ;;  %v558_v9 = vld [vmem:[%s822_s4 + $0x14] sm:$0xf0]  ;;  %v485_v11 = vld [vmem:[%s823_s5 + $0x48] sm:$0xf0]  ;;  %v114_v18 = vcvt.s32.f32 %v112_v6 }
   0x3   :  { %v113_v2 = vcvt.s32.f32 %v111_v1  ;;  %v40_v3 = vld [vmem:[%s822_s4 + $0x20] sm:$0xff]  ;;  %v565_v14 = vld [vmem:[%s823_s5 + $0x34] sm:$0xf]  ;;  %v477_v15 = vld [vmem:[%s823_s5 + $0x38] sm:$0xf0]  ;;  %v438_v19 = vor.u32 %v558_v9, %v437_v7 }
   0x4   :  { %v60_v4 = vunpack.c.l.b16 %v40_v3  ;;  %v61_v5 = vunpack.c.h.b16 %v40_v3  ;;  %v567_v10 = vld [vmem:[%s823_s5 + $0x44] sm:$0xf]  ;;  %v429_v20 = vld [vmem:[%s822_s4] sm:$0xf]  ;;  %v556_v21 = vld [vmem:[%s822_s4 + $0x4] sm:$0xf0]  ;;  %v480_v22 = vor.u32 %v565_v14, %v477_v15 }
   0x5   :  { %445 = vmatmul.msk.f32.vlgmr.msra.gmra.mxu2 %vm116_vm0, %v113_v2  ;;  %v488_v13 = vor.u32 %v567_v10, %v485_v11  ;;  %v483_v23 = vld [vmem:[%s823_s5 + $0x40] sm:$0xf]  ;;  %v568_v24 = vld [vmem:[%s823_s5 + $0x44] sm:$0xf0]  ;;  %v430_v25 = vor.u32 %v556_v21, %v429_v20  ;;  %v475_v29 = vld [vmem:[%s823_s5 + $0x30] sm:$0xf] }
   0x6   :  { %v66_v8 = vpack.c.b16 %v60_v4, %v60_v4  ;;  %v67_v12 = vpack.c.b16 %v61_v5, %v61_v5  ;;  %v33_v26 = vld [vmem:[%s825_s0] sm:$0xff]  ;;  %v34_v27 = vld [vmem:[%s825_s0 + $0x8] sm:$0xff]  ;;  %v484_v28 = vor.u32 %v568_v24, %v483_v23  ;;  %v566_v30 = vld [vmem:[%s823_s5 + $0x34] sm:$0xf0] }
   0x7   :  { %238 = vmatpush.bf16.msrb.mxu2 %v488_v13  ;;  %v35_v31 = vpack.c.bf16 %v34_v27, %v33_v26  ;;  %v476_v32 = vor.u32 %v566_v30, %v475_v29  ;;  %v467_v33 = vld [vmem:[%s823_s5 + $0x20] sm:$0xf]  ;;  %v564_v34 = vld [vmem:[%s823_s5 + $0x24] sm:$0xf0]  ;;  %v563_v36 = vld [vmem:[%s823_s5 + $0x24] sm:$0xf] }
   0x8   :  { %v78_v16 = vsel %vm76_vm1, %v66_v8, 0  ;;  %v81_v17 = vsel %vm76_vm1, %v67_v12, 0  ;;  %v468_v35 = vor.u32 %v564_v34, %v467_v33  ;;  %v469_v37 = vld [vmem:[%s823_s5 + $0x28] sm:$0xf0]  ;;  %v557_v39 = vld [vmem:[%s822_s4 + $0x14] sm:$0xf] }
   0x9   :  { %88 = vmatpush.bf16.msra.mxu3 %v78_v16  ;;  %102 = vmatpush.bf16.msra.mxu1 %v81_v17  ;;  %v472_v38 = vor.u32 %v563_v36, %v469_v37  ;;  %v439_v40 = vld [vmem:[%s822_s4 + $0x18] sm:$0xf0]  ;;  %v459_v42 = vld [vmem:[%s823_s5 + $0x10] sm:$0xf]  ;;  %v562_v43 = vld [vmem:[%s823_s5 + $0x14] sm:$0xf0] }
   0xa   :  { %v442_v41 = vor.u32 %v557_v39, %v439_v40  ;;  %v561_v44 = vld [vmem:[%s823_s5 + $0x14] sm:$0xf]  ;;  %v460_v45 = vor.u32 %v562_v43, %v459_v42  ;;  %v461_v46 = vld [vmem:[%s823_s5 + $0x18] sm:$0xf0]  ;;  %v555_v47 = vld [vmem:[%s822_s4 + $0x4] sm:$0xf] }
   0xb   :  { %239 = vmatpush.bf16.msrb.mxu2 %v480_v22  ;;  %v431_v48 = vld [vmem:[%s822_s4 + $0x8] sm:$0xf0]  ;;  %v464_v49 = vor.u32 %v561_v44, %v461_v46  ;;  %v451_v51 = vld [vmem:[%s823_s5] sm:$0xf]  ;;  %v560_v52 = vld [vmem:[%s823_s5 + $0x4] sm:$0xf0] }
   0xc   :  { %v434_v50 = vor.u32 %v555_v47, %v431_v48  ;;  %v559_v53 = vld [vmem:[%s823_s5 + $0x4] sm:$0xf]  ;;  %v452_v54 = vor.u32 %v560_v52, %v451_v51  ;;  %v453_v55 = vld [vmem:[%s823_s5 + $0x8] sm:$0xf0]  ;;  %v576_v57 = vld [vmem:[%s826_s7 + $0x38] sm:$0xff] }
   0xd   :  { %446 = vmatmul.msk.f32.gmra.mxu2 %vm116_vm0, %v114_v18  ;;  %89 = vmatpush.bf16.msra.mxu3 %v438_v19  ;;  %v456_v56 = vor.u32 %v559_v53, %v453_v55  ;;  %v584_v58 = vld [vmem:[%s826_s7 + $0x78] sm:$0xff]  ;;  %v586_v60 = vld [vmem:[%s824_s2] ss:$0 sm:$0xff]  ;;  %v575_v2 = vld [vmem:[%s826_s7 + $0x30] sm:$0xff] }
   0xe   :  { %103 = vmatpush.bf16.msra.mxu1 %v442_v41  ;;  %391 = vmatpush.bf16.msra.mxu0 %v576_v57  ;;  %v583_v3 = vld [vmem:[%s826_s7 + $0x70] sm:$0xff]  ;;  %v574_v4 = vld [vmem:[%s826_s7 + $0x28] sm:$0xff]  ;;  %v573_v6 = vld [vmem:[%s826_s7 + $0x20] sm:$0xff] }
   0xf   :  { %240 = vmatpush.bf16.msrb.mxu2 %v472_v38  ;;  %v582_v5 = vld [vmem:[%s826_s7 + $0x68] sm:$0xff]  ;;  %v581_v7 = vld [vmem:[%s826_s7 + $0x60] sm:$0xff]  ;;  %v572_v8 = vld [vmem:[%s826_s7 + $0x18] sm:$0xff] }
  0x10   :  { %v580_v9 = vld [vmem:[%s826_s7 + $0x58] sm:$0xff]  ;;  %v571_v10 = vld [vmem:[%s826_s7 + $0x10] sm:$0xff]  ;;  %v570_v12 = vld [vmem:[%s826_s7 + $0x8] sm:$0xff] }
  0x11   :  { %90 = vmatpush.bf16.msra.mxu3 %v430_v25  ;;  %v579_v11 = vld [vmem:[%s826_s7 + $0x50] sm:$0xff]  ;;  %v578_v13 = vld [vmem:[%s826_s7 + $0x48] sm:$0xff]  ;;  %v569_v15 = vld [vmem:[%s826_s7] sm:$0xff] }
  0x12   :  { %104 = vmatpush.bf16.msra.mxu1 %v434_v50  ;;  %392 = vmatpush.bf16.msra.mxu0 %v575_v2  ;;  %v577_v16 = vld [vmem:[%s826_s7 + $0x40] sm:$0xff] }
  0x13   :  { %241 = vmatpush.bf16.msrb.mxu2 %v464_v49  ;;  %v41_v19 = vld [vmem:[%s828_s6] sm:$0x3] }
  0x14   :  { %443 = vmatmul.msk.bf16.vlgmr.msra.gmra.mxu3 %vm72_vm2, %v35_v31  ;;  %v44_v20 = vperm.slane %v41_v19, 1  ;;  %v43_v21 = vperm.slane %v41_v19, 0  ;;  %v587_v41 = vld [vmem:[%s827_s8] ss:$0 sm:$0xff] }
  0x15   :  { %224 = vmatpush.bf16.msrb.mxu3 %v484_v28  ;;  %444 = vmatmul.msk.bf16.vlgmr.msra.gmra.mxu1 %vm72_vm2, %v35_v31 }
  0x16   :  { %405 = vmatpush.bf16.msrb.mxu1 %v584_v58  ;;  %393 = vmatpush.bf16.msra.mxu0 %v574_v4 }
  0x17   :  { %242 = vmatpush.bf16.msrb.mxu2 %v456_v56 }
  0x19   :  { %225 = vmatpush.bf16.msrb.mxu3 %v476_v32 }
  0x1a   :  { %406 = vmatpush.bf16.msrb.mxu1 %v583_v3  ;;  %394 = vmatpush.bf16.msra.mxu0 %v573_v6 }
  0x1d   :  { %226 = vmatpush.bf16.msrb.mxu3 %v468_v35 }
  0x1e   :  { %407 = vmatpush.bf16.msrb.mxu1 %v582_v5  ;;  %395 = vmatpush.bf16.msra.mxu0 %v572_v8 }
  0x21   :  { %227 = vmatpush.bf16.msrb.mxu3 %v460_v45 }
  0x22   :  { %408 = vmatpush.bf16.msrb.mxu1 %v581_v7  ;;  %396 = vmatpush.bf16.msra.mxu0 %v571_v10 }
  0x25   :  { %228 = vmatpush.bf16.msrb.mxu3 %v452_v54 }
  0x26   :  { %409 = vmatpush.bf16.msrb.mxu1 %v580_v9  ;;  %397 = vmatpush.bf16.msra.mxu0 %v570_v12 }
  0x2a   :  { %410 = vmatpush.bf16.msrb.mxu1 %v579_v11  ;;  %398 = vmatpush.bf16.msra.mxu0 %v569_v15 }
  0x2e   :  { %411 = vmatpush.bf16.msrb.mxu1 %v578_v13 }
  0x32   :  { %412 = vmatpush.bf16.msrb.mxu1 %v577_v16 }
  0x88   :  { %v140_v59 = vpop.f32.mrf.mxu2 }
  0x89   :  { %vm150_vm3 = vcmp.eq.f32.partialorder %v140_v59, %v586_v60 }
  0x8a   :  { %v447_v63 = vsel %vm150_vm3, 1.0, %v600_v62 }
  0x90   :  { %v143_v61 = vpop.f32.mrf.mxu2 }
  0x91   :  { %vm151_vm4 = vcmp.eq.f32.partialorder %v143_v61, %v586_v60 }
  0x92   :  { %v448_v0 = vsel %vm151_vm4, 1.0, %v600_v62  ;;  %v106_v18 = vpop.f32.mrf.mxu1 }
  0x93   :  { %v156_v1 = vpack.c.bf16 %v448_v0, %v447_v63  ;;  %v107_v24 = vadd.f32 %v106_v18, %v44_v20 }
  0x95   :  { %489 = vmatmul.msk.bf16.vlgmr.msrb.gmra.mxu3 %vm217_vm5, %v156_v1  ;;  %490 = vmatmul.msk.bf16.vlgmr.msrb.gmra.mxu2 %vm217_vm5, %v156_v1 }
  0x97   :  { %v92_v14 = vpop.f32.mrf.mxu3 }
  0x98   :  { %v93_v25 = vadd.f32 %v92_v14, %v43_v21 }
  0x9a   :  { %v108_v26 = vpop.f32.mrf.mxu1 }
  0x9b   :  { %v109_v30 = vadd.f32 %v108_v26, %v44_v20 }
  0x9f   :  { %v94_v17 = vpop.f32.mrf.mxu3 }
  0xa0   :  { %v95_v29 = vadd.f32 %v94_v17, %v43_v21 }
 0x118   :  { %v230_v22 = vpop.f32.mrf.mxu3  ;;  %v244_v23 = vpop.f32.mrf.mxu2 }
 0x119   :  { %v249_v27 = vadd.f32 %v230_v22, %v93_v25  ;;  %v250_v28 = vadd.f32 %v244_v23, %v107_v24 }
 0x11b   :  { %588 = vtanh.f32 %v249_v27 }
 0x11c   :  { %590 = vtanh.f32 %v250_v28 }
 0x120   :  { %v232_v31 = vpop.f32.mrf.mxu3  ;;  %v246_v32 = vpop.f32.mrf.mxu2 }
 0x121   :  { %v251_v33 = vadd.f32 %v232_v31, %v95_v29  ;;  %v252_v34 = vadd.f32 %v246_v32, %v109_v30  ;;  %v589_v35 = vpop.eup %588 }
 0x122   :  { %v591_v36 = vpop.eup %590 }
 0x123   :  { %592 = vtanh.f32 %v251_v33 }
 0x124   :  { %594 = vtanh.f32 %v252_v34 }
 0x129   :  { %v593_v37 = vpop.eup %592 }
 0x12a   :  { %v595_v38 = vpop.eup %594  ;;  %v290_v39 = vpack.c.bf16 %v593_v37, %v589_v35 }
 0x12b   :  { %v291_v40 = vpack.c.bf16 %v595_v38, %v591_v36 }
 0x12c   :  { %399 = vmatmul.bf16.vlgmr.msra.gmra.mxu0 %v290_v39 }
 0x12d   :  { %413 = vmatmul.bf16.vlgmr.msrb.gmra.mxu1 %v291_v40 }
 0x1a9   :  { %v400_v42 = vpop.f32.mrf.mxu0 }
 0x1aa   :  { %v401_v43 = vadd.f32 %v587_v41, %v400_v42  ;;  %v414_v44 = vpop.f32.mrf.mxu1 }
 0x1ac   :  { %v415_v45 = vadd.f32 %v414_v44, %v401_v43 }
 0x1ae   :  { %596 = vtanh.f32 %v415_v45 }
 0x1b1   :  { %v402_v46 = vpop.f32.mrf.mxu0 }
 0x1b2   :  { %v403_v47 = vadd.f32 %v587_v41, %v402_v46  ;;  %v416_v48 = vpop.f32.mrf.mxu1 }
 0x1b4   :  { %v597_v49 = vpop.eup %596  ;;  %v417_v50 = vadd.f32 %v416_v48, %v403_v47 }
 0x1b5   :  { %421 = vst [vmem:[%s829_s9] sm:$0xff] %v597_v49 }
 0x1b6   :  { %598 = vtanh.f32 %v417_v50 }
 0x1bc   :  { %v599_v51 = vpop.eup %598 }
 0x1bd   :  { %422 = vst [vmem:[%s829_s9 + $0x8] sm:$0xff] %v599_v51 }

</bundles_post_ra>
